<compile_context>
chip_gen: v5e
topology: v5e:2x2
jax: 0.10.0
libtpu: 0.0.40
codegen_flags: <defaults>
</compile_context>

<pallas_src>
import jax
import jax.numpy as jnp
from jax.experimental import pallas as pl
from jax.experimental.pallas import tpu as pltpu


_LANE = 128
_SUBLANE = 8
_MIN_ROWS_PER_CORE = 128   # don't force a grid split below this many rows/step


def _round_up(x, m):
    return ((x + m - 1) // m) * m


def _pick_batch_tile(B, Din, pad_width, *, vmem_budget_bytes=8 * 1024 * 1024,
                     max_tile=4096):
    """Batch tile sized from a VMEM budget for the pipelined (x, out) blocks."""
    # Per grid step (double-buffered input + output blocks, f32):
    bytes_per_row = 2 * (Din + pad_width) * 4
    tb = min(max_tile, max(_SUBLANE, vmem_budget_bytes // bytes_per_row))
    if B >= 2 * _MIN_ROWS_PER_CORE:
        # Keep >= 2 grid steps so dimension_semantics=("parallel",) can shard
        # the batch across v7x's two TensorCores (no-op on single-TC v5e/v6e),
        # and so the pipeline has something to overlap.
        tb = min(tb, _round_up(pl.cdiv(B, 2), _SUBLANE))
    tb = max(_SUBLANE, (tb // _SUBLANE) * _SUBLANE)
    return tb


def _make_fused_mlp_kernel(num_layers, din, dout_last):
    """Kernel refs = (x, w0, b0, w1, b1, ..., out)."""

    def kernel(*refs):
        x_ref = refs[0]
        o_ref = refs[-1]
        layer_refs = refs[1:-1]

        x = x_ref[...]
        h = x
        # Entire MLP computed in VMEM/vregs; no HBM round-trips between layers.
        for li in range(num_layers):
            w = layer_refs[2 * li][...]
            b = layer_refs[2 * li + 1][...]
            h = jnp.maximum(
                jnp.dot(h, w, preferred_element_type=jnp.float32) + b, 0.0)

        tb = x_ref.shape[0]
        # concat([ones, input, h]) as three direct sub-slice stores; the lane
        # padding beyond `1 + din + dout_last` is left undefined (the wrapper
        # slices it off), so no zero slab / concatenate is materialized.
        o_ref[:, 0:1] = jnp.ones((tb, 1), o_ref.dtype)
        o_ref[:, 1:1 + din] = x.astype(o_ref.dtype)
        o_ref[:, 1 + din:1 + din + dout_last] = h.astype(o_ref.dtype)

    return kernel


def net_forward(params, x, *, vmem_budget_bytes=8 * 1024 * 1024):
    """Fused forward: relu-MLP + [ones | input | output] concat, one pallas_call."""
    B, Din = x.shape
    linears = params["linears"]
    Dout = linears[-1][0].shape[1]
    total = 1 + Din + Dout
    pad = _round_up(total, _LANE)          # lane-dense output width

    kernel = _make_fused_mlp_kernel(len(linears), Din, Dout)

    args = [x.astype(jnp.float32)]
    for (w, b) in linears:
        args.append(w)
        args.append(b)

    out_shape = jax.ShapeDtypeStruct((B, pad), jnp.float32)

    TB = _pick_batch_tile(B, Din, pad, vmem_budget_bytes=vmem_budget_bytes)
    num_steps = pl.cdiv(B, TB)

    if num_steps <= 1:
        # Tiny-batch fast path: whole arrays as single VMEM blocks, no grid
        # pipeline — avoids per-step prologue/epilogue for sub-microsecond work.
        vmem_spec = pl.BlockSpec(memory_space=pltpu.MemorySpace.VMEM)
        out_padded = pl.pallas_call(
            kernel,
            out_shape=out_shape,
            in_specs=[vmem_spec] * len(args),
            out_specs=vmem_spec,
        )(*args)
    else:
        in_specs = [pl.BlockSpec((TB, Din), lambda i: (i, 0))]
        for (w, b) in linears:
            din, dout = w.shape
            # Resident whole-array weights/biases (constant index_map).
            # TODO(synk): pl.Buffered(1) / K-axis accumulator once hidden dims
            # grow enough to pressure v7x's 64 MiB VMEM (irrelevant at 16x32).
            in_specs.append(pl.BlockSpec((din, dout), lambda i: (0, 0)))
            in_specs.append(pl.BlockSpec((1, dout), lambda i: (0, 0)))

        out_padded = pl.pallas_call(
            kernel,
            out_shape=out_shape,
            grid=(num_steps,),
            in_specs=in_specs,
            out_specs=pl.BlockSpec((TB, pad), lambda i: (i, 0)),
            compiler_params=pltpu.CompilerParams(
                # Independent batch tiles -> shard across v7x's two TCs.
                dimension_semantics=("parallel",),
                # Portable scoped-VMEM ceiling: generous for large tiles yet
                # below v7x's 64 MiB physical VMEM.
                vmem_limit_bytes=48 * 1024 * 1024,
            ),
        )(*args)

    # Strip lane padding (layout glue only; pad lanes are undefined).
    return out_padded[:, :total]


def init_params(key, input_dim, output_dim, hl_sizes):
    """Synthetic init mirroring the PyTorch module's parameter shapes.

    Weights are stored transposed, (in_features, out_features), so the kernel
    computes y = relu(x @ W + b) directly.
    """
    params = {"linears": []}
    current_dim = input_dim
    for hl_dim in hl_sizes:
        key, kw, kb = jax.random.split(key, 3)
        bound = 1.0 / float(jnp.sqrt(jnp.float32(current_dim)))
        w = jax.random.uniform(kw, (current_dim, hl_dim), jnp.float32, -bound, bound)
        b = jax.random.uniform(kb, (1, hl_dim), jnp.float32, -bound, bound)
        params["linears"].append((w, b))
        current_dim = hl_dim
    key, kl = jax.random.split(key)
    # Lgen exists in the module but is not used in forward().
    params["Lgen"] = jax.random.uniform(kl, (output_dim, output_dim), jnp.float32)
    return params


def _reference(params, x):
    h = x
    for (w, b) in params["linears"]:
        h = jnp.maximum(h @ w + b, 0.0)
    return jnp.concatenate(
        [jnp.ones((x.shape[0], 1), jnp.float32), x, h], axis=1)


if __name__ == "__main__":
    input_dim = 16
    hl_sizes = [32, 8]
    output_dim = 8            # only affects the (unused-in-forward) Lgen param

    key = jax.random.PRNGKey(0)
    params = init_params(key, input_dim, output_dim, hl_sizes)

    forward = jax.jit(net_forward)

    # batch=2 exercises the tiny-B no-grid fast path;
    # batch=1024 exercises the tiled/pipelined path (2 parallel grid steps).
    for batch in (2, 1024):
        kx = jax.random.fold_in(jax.random.PRNGKey(1), batch)
        x = jax.random.normal(kx, (batch, input_dim), dtype=jnp.float32)

        out = jax.block_until_ready(forward(params, x))

        assert out.shape == (batch, 1 + input_dim + hl_sizes[-1]), out.shape
        ref = _reference(params, x)
        assert jnp.allclose(out, ref, atol=1e-5, rtol=1e-5), (
            float(jnp.max(jnp.abs(out - ref))))

    print("KERNEL_OK")
</pallas_src>

<mosaic_0001>
module attributes {stable_mosaic.version = 11 : i64} {
  func.func @kernel(%arg0: memref<2x16xf32, #tpu.memory_space<vmem>>, %arg1: memref<16x32xf32, #tpu.memory_space<vmem>>, %arg2: memref<1x32xf32, #tpu.memory_space<vmem>>, %arg3: memref<32x8xf32, #tpu.memory_space<vmem>>, %arg4: memref<1x8xf32, #tpu.memory_space<vmem>>, %arg5: memref<2x128xf32, #tpu.memory_space<vmem>>) attributes {dimension_semantics = [], scalar_prefetch = 0 : i64, scratch_operands = 0 : i64, tpu.core_type = #tpu.core_type<tc>} {
    %c0 = arith.constant 0 : index
    %c0_0 = arith.constant 0 : index
    %0 = vector.load %arg0[%c0, %c0_0] : memref<2x16xf32, #tpu.memory_space<vmem>>, vector<2x16xf32>
    %c0_1 = arith.constant 0 : index
    %c0_2 = arith.constant 0 : index
    %1 = vector.load %arg1[%c0_1, %c0_2] : memref<16x32xf32, #tpu.memory_space<vmem>>, vector<16x32xf32>
    %c0_3 = arith.constant 0 : index
    %c0_4 = arith.constant 0 : index
    %2 = vector.load %arg2[%c0_3, %c0_4] : memref<1x32xf32, #tpu.memory_space<vmem>>, vector<1x32xf32>
    %cst = arith.constant dense<0.000000e+00> : vector<2x32xf32>
    %3 = tpu.matmul %0, %1, %cst {dimension_numbers = #tpu.dot_dimension_numbers<[1], [0], [0], [1], [0, 0, 1, 1], [], []>} : vector<2x16xf32>, vector<16x32xf32>, vector<2x32xf32> -> vector<2x32xf32>
    %4 = vector.broadcast %2 : vector<1x32xf32> to vector<2x32xf32>
    %5 = arith.addf %3, %4 : vector<2x32xf32>
    %cst_5 = arith.constant 0.000000e+00 : f32
    %6 = vector.broadcast %cst_5 : f32 to vector<2x32xf32>
    %7 = arith.maximumf %5, %6 : vector<2x32xf32>
    %c0_6 = arith.constant 0 : index
    %c0_7 = arith.constant 0 : index
    %8 = vector.load %arg3[%c0_6, %c0_7] : memref<32x8xf32, #tpu.memory_space<vmem>>, vector<32x8xf32>
    %c0_8 = arith.constant 0 : index
    %c0_9 = arith.constant 0 : index
    %9 = vector.load %arg4[%c0_8, %c0_9] : memref<1x8xf32, #tpu.memory_space<vmem>>, vector<1x8xf32>
    %cst_10 = arith.constant dense<0.000000e+00> : vector<2x8xf32>
    %10 = tpu.matmul %7, %8, %cst_10 {dimension_numbers = #tpu.dot_dimension_numbers<[1], [0], [0], [1], [0, 0, 1, 1], [], []>} : vector<2x32xf32>, vector<32x8xf32>, vector<2x8xf32> -> vector<2x8xf32>
    %11 = vector.broadcast %9 : vector<1x8xf32> to vector<2x8xf32>
    %12 = arith.addf %10, %11 : vector<2x8xf32>
    %cst_11 = arith.constant 0.000000e+00 : f32
    %13 = vector.broadcast %cst_11 : f32 to vector<2x8xf32>
    %14 = arith.maximumf %12, %13 : vector<2x8xf32>
    %cst_12 = arith.constant 1.000000e+00 : f32
    %15 = vector.broadcast %cst_12 : f32 to vector<2x1xf32>
    %c0_13 = arith.constant 0 : index
    %c0_14 = arith.constant 0 : index
    %16 = vector.load %arg5[%c0_13, %c0_14] : memref<2x128xf32, #tpu.memory_space<vmem>>, vector<2x1xf32>
    tpu.vector_store %arg5[%c0_13, %c0_14], %15 {strides = array<i32>} : memref<2x128xf32, #tpu.memory_space<vmem>>, vector<2x1xf32>,
    %c0_15 = arith.constant 0 : index
    %c1 = arith.constant 1 : index
    %17 = vector.load %arg5[%c0_15, %c1] : memref<2x128xf32, #tpu.memory_space<vmem>>, vector<2x16xf32>
    tpu.vector_store %arg5[%c0_15, %c1], %0 {strides = array<i32>} : memref<2x128xf32, #tpu.memory_space<vmem>>, vector<2x16xf32>,
    %c0_16 = arith.constant 0 : index
    %c17 = arith.constant 17 : index
    %18 = vector.load %arg5[%c0_16, %c17] : memref<2x128xf32, #tpu.memory_space<vmem>>, vector<2x8xf32>
    tpu.vector_store %arg5[%c0_16, %c17], %14 {strides = array<i32>} : memref<2x128xf32, #tpu.memory_space<vmem>>, vector<2x8xf32>,
    return
  }
}

</mosaic_0001>

<bundles_post_ra>
// kernel: net_forward.1
= control target key start
LH: loop header
LB: loop body
LE: loop exit
PB: predicated region body
PF: predicated region fallthrough
CT: control target
= control target key end

     0   :  { %vm28_vm0 = vcmask 130048   ;;  %s213_s0 = inlined_call_operand.vmem [shape: f32[2,16], index: 0, kind: input, shape index: {}]   ;;  %s214_s1 = inlined_call_operand.vmem [shape: f32[16,32], index: 1, kind: input, shape index: {}]   ;;  %s215_s2 = inlined_call_operand.vmem [shape: f32[1,32], index: 2, kind: input, shape index: {}]   ;;  %s216_s3 = inlined_call_operand.vmem [shape: f32[32,8], index: 3, kind: input, shape index: {}]   ;;  %s217_s4 = inlined_call_operand.vmem [shape: f32[1,8], index: 4, kind: input, shape index: {}]   ;;  %s218_s5 = inlined_call_operand.hbm [shape: f32[2,128], index: 5, kind: output, shape index: {}]  }
   0x1   :  { %v23_v0 = vld [vmem:[%s214_s1 + $0x8] sm:$0xff]  ;;  %v22_v1 = vld [vmem:[%s214_s1] sm:$0xff]  ;;  %v56_v3 = vld [vmem:[%s216_s3 + $0x18] sm:$0xff] }
   0x2   :  { %46 = vmatpush.msra.mxu0 %v23_v0  ;;  %v21_v2 = vld [vmem:[%s213_s0] sm:$0x3]  ;;  %77 = vmatpush.msra.mxu1 %v56_v3 }
   0x3   :  { %10 = vsyncpa [#allocation3], 0  ;;  %s149_s26 = smov 1   ;;  %v55_v4 = vld [vmem:[%s216_s3 + $0x10] sm:$0xff]  ;;  %v54_v5 = vld [vmem:[%s216_s3 + $0x8] sm:$0xff]  ;;  %vm61_vm1 = vcmask 261120  }
   0x4   :  { %47 = vmatpush.msra.mxu0 %v22_v1  ;;  %88 = vrot.lane.b32.xlu0 %v21_v2, %s149_s26  ;;  %v53_v6 = vld [vmem:[%s216_s3] sm:$0xff]  ;;  %vm86_vm2 = vcmask 1024   ;;  %vm91_vm3 = vcmask 132104   ;;  %v150_v12 = vmov 1.0   ;;  %s151_s3 = smov 17   ;;  %s106_s13 = sshll.u32 %s218_s5, 4  ;;  %s107_s13 = int_to_ptr.hbm [resolvable:$true] %s106_s13 }
   0x5   :  { %115 = vmatmul.msk.f32.vlgmr.msra.gmra.mxu0 %vm28_vm0, %v21_v2  ;;  %78 = vmatpush.msra.mxu1 %v55_v4  ;;  %v121_v7 = vld [vmem:[%s215_s2] ss:$0 sm:$0xff]  ;;  %87 = vst.msk [vmem:[#allocation2] sm:$0x3] %vm86_vm2, %v150_v12  ;;  %s152_s2 = smov [#allocation2]   ;;  %vm97_vm4 = vcmask 197768  }
   0x6   :  { %v122_v13 = vld [vmem:[%s217_s4] ss:$0 sm:$0xff]  ;;  %s104_s10 = sshll.u32 %s152_s2, 4  ;;  %s105_s10 = int_to_ptr.vmem [resolvable:$true] %s104_s10 }
   0x7   :  { %79 = vmatpush.msra.mxu1 %v54_v5 }
   0x9   :  { %80 = vmatpush.msra.mxu1 %v53_v6 }
  0x76   :  { %v89_v11 = vpop.permute.xlu0 %88 }
  0x77   :  { %92 = vst.msk [vmem:[#allocation2] sm:$0x3] %vm91_vm3, %v89_v11 }
  0x82   :  { %v49_v8 = vpop.f32.mrf.mxu0 }
  0x83   :  { %v50_v9 = vadd.f32 %v121_v7, %v49_v8 }
  0x85   :  { %v52_v10 = vmax.f32 %v50_v9, 0.0 }
  0x87   :  { %116 = vmatmul.msk.f32.vlgmr.msra.gmra.mxu1 %vm61_vm1, %v52_v10 }
 0x104   :  { %v82_v14 = vpop.f32.mrf.mxu1 }
 0x105   :  { %v83_v15 = vadd.f32 %v122_v13, %v82_v14 }
 0x107   :  { %v85_v16 = vmax.f32 %v83_v15, 0.0 }
 0x109   :  { %94 = vrot.lane.b32.xlu0 %v85_v16, %s151_s3 }
 0x17b   :  { %v95_v17 = vpop.permute.xlu0 %94 }
 0x17c   :  { %98 = vst.msk [vmem:[#allocation2] sm:$0x3] %vm97_vm4, %v95_v17 }
 0x17d   :  { %109 = dma.vmem_to_hbm [thread:$0]  %s105_s10, 32, %s107_s13, [#allocation3]  }
 0x17e   :  { %147 = dma.done.wait [#allocation3], 32  }
 0x17f   :  { %148 = vsyncadd [#allocation3], 4294967264 }
 0x180   :  { %114 = vsyncpa [#allocation3], 1 }

</bundles_post_ra>
